<compile_context>
chip_gen: v6e
topology: v6e:2x2x1
jax: 0.10.0
libtpu: 0.0.40
codegen_flags: <defaults>
</compile_context>

<pallas_src>
import functools
import math

import jax
import jax.numpy as jnp
from jax.experimental import pallas as pl
from jax.experimental.pallas import tpu as pltpu


def _round_up(n: int, m: int) -> int:
    return -(-n // m) * m


def _vmem_capacity_bytes() -> int:
    """Per-core VMEM capacity; conservative 64 MiB (v7x) fallback."""
    try:
        cap = getattr(pltpu.get_tpu_info(), "vmem_capacity_bytes", None)
        if cap:
            return int(cap)
    except Exception:
        pass
    return 64 << 20


def _rmsnorm_kernel(x_ref, w_ref, o_ref, *, eps: float, inv_dim: float):
    # torch: output = (x.float() * rsqrt(mean(x.float()^2, -1) + eps)).type_as(x) * weight
    x = x_ref[...].astype(jnp.float32)
    # Sum-of-squares * 1/true_dim: exact even when the lane axis is zero-padded.
    ms = jnp.sum(x * x, axis=-1, keepdims=True) * inv_dim
    normed = (x * jax.lax.rsqrt(ms + eps)).astype(x_ref.dtype)     # .type_as(x)
    # Weight multiply in f32 (w pre-cast in wrapper), single cast to out dtype.
    o_ref[...] = (normed.astype(jnp.float32) * w_ref[...]).astype(o_ref.dtype)


def rmsnorm(x: jax.Array, weight: jax.Array, eps: float,
            *, row_block: int | None = None,
            target_tile_bytes: int | None = None) -> jax.Array:
    """RMSNorm over the last dim of x. x: (..., dim), weight: (dim,)."""
    orig_shape = x.shape
    dim = orig_shape[-1]
    rows = int(math.prod(orig_shape[:-1])) if len(orig_shape) > 1 else 1
    out_dtype = jnp.promote_types(x.dtype, weight.dtype)   # torch promotion of out * weight

    x2d = x.reshape(rows, dim)
    w2d = weight.astype(jnp.float32).reshape(1, dim)        # pre-cast once; block is replicated

    # Lane-dense stores: pad the feature dim to a multiple of 128 (zeros don't
    # perturb the sum of squares; padded weight=0 so padded output cols are 0).
    dim_p = _round_up(dim, 128)
    if dim_p != dim:
        x2d = jnp.pad(x2d, ((0, 0), (0, dim_p - dim)))
        w2d = jnp.pad(w2d, ((0, 0), (0, dim_p - dim)))

    x_bytes = jnp.dtype(x.dtype).itemsize
    out_bytes = jnp.dtype(out_dtype).itemsize
    big_bytes = max(x_bytes, out_bytes)
    # Sublane packing multiple: 8 rows (4-byte), 16 (2-byte), 32 (1-byte).
    pack = 8 * max(1, 4 // x_bytes)

    vmem_cap = _vmem_capacity_bytes()
    if target_tile_bytes is None:
        # ~1/16 of VMEM per tile -> ~6x-tile working set stays ~= 0.4 * VMEM.
        # v7x (64 MiB): ~4 MiB tiles; v5e/v6e (128 MiB): ~8 MiB tiles.
        target_tile_bytes = max(2 << 20, vmem_cap // 16)

    if row_block is None:
        rb = target_tile_bytes // max(1, dim_p * big_bytes)
        rb = max(pack, (rb // pack) * pack)
    else:
        rb = _round_up(max(int(row_block), pack), pack)

    # Guarantee >=4 grid steps when the problem allows it (keeps both v7x
    # TensorCores fed and gives double-buffering overlap headroom).
    if rows > 4 * pack:
        rb = min(rb, _round_up(pl.cdiv(rows, 4), pack))
    if rb >= rows:
        rb = rows                       # single full-extent block (always legal)

    # Ragged last block handled by Pallas: OOB reads harmless (per-row math),
    # OOB writes masked. No jnp.pad / output slice on the row axis.
    grid = (pl.cdiv(rows, rb),)

    # VMEM budget: double-buffered x and out tiles + f32 temporaries + weight.
    tile_vmem = (2 * rb * dim_p * x_bytes        # x double buffer
                 + 2 * rb * dim_p * out_bytes    # out double buffer
                 + 2 * rb * dim_p * 4            # f32 upcast + product temporaries
                 + 2 * dim_p * 4)                # weight (f32, replicated block)
    vmem_limit = int(min(max(int(1.5 * tile_vmem), 16 << 20), (vmem_cap * 7) // 10))

    out2d = pl.pallas_call(
        functools.partial(_rmsnorm_kernel, eps=eps, inv_dim=1.0 / dim),
        out_shape=jax.ShapeDtypeStruct((rows, dim_p), out_dtype),
        grid_spec=pltpu.PrefetchScalarGridSpec(
            num_scalar_prefetch=0,
            grid=grid,
            in_specs=[
                pl.BlockSpec((rb, dim_p), lambda i: (i, 0)),   # x row tile
                pl.BlockSpec((1, dim_p), lambda i: (0, 0)),    # weight (replicated)
            ],
            out_specs=pl.BlockSpec((rb, dim_p), lambda i: (i, 0)),
        ),
        compiler_params=pltpu.CompilerParams(
            dimension_semantics=("parallel",),
            vmem_limit_bytes=vmem_limit,
        ),
    )(x2d, w2d)

    if dim_p != dim:
        out2d = out2d[:, :dim]
    return out2d.reshape(orig_shape)


def rmsnorm_ref(x, weight, eps):
    # Matches the torch module: norm in f32, cast to x dtype, then * weight.
    xf = x.astype(jnp.float32)
    inv = jax.lax.rsqrt(jnp.mean(xf * xf, axis=-1, keepdims=True) + eps)
    return (xf * inv).astype(x.dtype) * weight


if __name__ == "__main__":
    # Shapes implied by the module: x (batch, seq, hidden), weight (hidden,)
    batch, seq, hidden = 2, 8, 32
    eps = 1e-6

    key = jax.random.PRNGKey(0)
    x = jax.random.normal(key, (batch, seq, hidden), dtype=jnp.float32)
    # Deterministic parameter init: torch.ones(dim)
    weight = jnp.ones((hidden,), dtype=jnp.float32)

    out = rmsnorm(x, weight, eps)
    out = jax.block_until_ready(out)

    ref = rmsnorm_ref(x, weight, eps)
    assert out.shape == x.shape and out.dtype == ref.dtype
    assert jnp.allclose(out, ref, atol=1e-5, rtol=1e-5)

    print("KERNEL_OK")
</pallas_src>

<mosaic_0001>
module attributes {stable_mosaic.version = 11 : i64} {
  func.func @_rmsnorm_kernel(%arg0: i32, %arg1: memref<16x128xf32, #tpu.memory_space<vmem>>, %arg2: memref<1x128xf32, #tpu.memory_space<vmem>>, %arg3: memref<16x128xf32, #tpu.memory_space<vmem>>) attributes {dimension_semantics = [#tpu.dimension_semantics<parallel>], iteration_bounds = array<i64: 1>, scalar_prefetch = 0 : i64, scratch_operands = 0 : i64, tpu.core_type = #tpu.core_type<tc>, window_params = [{transform_indices = @transform_0, window_bounds = array<i64: 16, 128>}, {pipeline_mode = #tpu.pipeline_mode<synchronous>, transform_indices = @transform_1, window_bounds = array<i64: 1, 128>}, {transform_indices = @transform_2, window_bounds = array<i64: 16, 128>}]} {
    %c0 = arith.constant 0 : index
    %c0_0 = arith.constant 0 : index
    %0 = vector.load %arg1[%c0, %c0_0] : memref<16x128xf32, #tpu.memory_space<vmem>>, vector<16x128xf32>
    %1 = arith.mulf %0, %0 : vector<16x128xf32>
    %cst = arith.constant dense<0.000000e+00> : vector<16xf32>
    %2 = vector.multi_reduction <add>, %1, %cst [1] : vector<16x128xf32> to vector<16xf32>
    %3 = vector.shape_cast %2 : vector<16xf32> to vector<16x1xf32>
    %cst_1 = arith.constant 3.125000e-02 : f32
    %4 = vector.broadcast %cst_1 : f32 to vector<16x1xf32>
    %5 = arith.mulf %3, %4 : vector<16x1xf32>
    %cst_2 = arith.constant 9.99999997E-7 : f32
    %6 = vector.broadcast %cst_2 : f32 to vector<16x1xf32>
    %7 = arith.addf %5, %6 : vector<16x1xf32>
    %8 = math.rsqrt %7 : vector<16x1xf32>
    %9 = vector.broadcast %8 : vector<16x1xf32> to vector<16x128xf32>
    %10 = arith.mulf %0, %9 : vector<16x128xf32>
    %c0_3 = arith.constant 0 : index
    %c0_4 = arith.constant 0 : index
    %11 = vector.load %arg2[%c0_3, %c0_4] : memref<1x128xf32, #tpu.memory_space<vmem>>, vector<1x128xf32>
    %12 = vector.broadcast %11 : vector<1x128xf32> to vector<16x128xf32>
    %13 = arith.mulf %10, %12 : vector<16x128xf32>
    %c0_5 = arith.constant 0 : index
    %c0_6 = arith.constant 0 : index
    %14 = vector.load %arg3[%c0_5, %c0_6] : memref<16x128xf32, #tpu.memory_space<vmem>>, vector<16x128xf32>
    tpu.vector_store %arg3[%c0_5, %c0_6], %13 {strides = array<i32>} : memref<16x128xf32, #tpu.memory_space<vmem>>, vector<16x128xf32>,
    return
  }
  func.func @transform_0(%arg0: i32) -> (i32, i32) {
    %c0_i32 = arith.constant 0 : i32
    %c0_i32_0 = arith.constant 0 : i32
    return %arg0, %c0_i32 : i32, i32
  }
  func.func @transform_1(%arg0: i32) -> (i32, i32) {
    %c0_i32 = arith.constant 0 : i32
    %c0_i32_0 = arith.constant 0 : i32
    %c0_i32_1 = arith.constant 0 : i32
    return %c0_i32, %c0_i32_0 : i32, i32
  }
  func.func @transform_2(%arg0: i32) -> (i32, i32) {
    %c0_i32 = arith.constant 0 : i32
    %c0_i32_0 = arith.constant 0 : i32
    return %arg0, %c0_i32 : i32, i32
  }
}

</mosaic_0001>

<bundles_post_ra>
// kernel: tpu_custom_call.1
= control target key start
LH: loop header
LB: loop body
LE: loop exit
PB: predicated region body
PF: predicated region fallthrough
CT: control target
= control target key end

     0   :  { %7 = vsyncpa [#allocation3], 0  ;;  %s157_s0 = inlined_call_operand.hbm [shape: f32[16,128], index: 0, kind: input, shape index: {}]   ;;  %s158_s1 = inlined_call_operand.vmem [shape: f32[1,128], index: 1, kind: input, shape index: {}]   ;;  %s159_s2 = inlined_call_operand.hbm [shape: f32[16,128], index: 2, kind: output, shape index: {}]  }
   0x1   :  { %8 = vsyncpa [#allocation4], 0  ;;  %s123_s9 = smov [#allocation2]  }
   0x2   :  { %s14_s10 = sshll.u32 %s123_s9, 4  ;;  %s15_s10 = int_to_ptr.vmem [resolvable:$true] %s14_s10 }
   0x3   :  { %s87_s11 = scalar_lea.vmem %s15_s10, 256  ;;  %p92_p1 = scmp.lt.s32.totalorder %s15_s10, %s15_s10 }
   0x4   :  { %p88_p0 = scmp.ne.s32.totalorder %s15_s10, %s87_s11  ;;  %p93_p2 = scmp.lt.s32.totalorder %s87_s11, %s87_s11 }
   0x6   :  { %p94_p3 = por %p93_p2, %p92_p1 }
   0x8   :  { %p95_p4 = pnand %p94_p3, %p88_p0 }
   0xa   :  { %98 = shalt.err (!%p95_p4)
}
   0xb   :  { %s124_s12 = smov 128   ;;  %s125_s13 = smov 8  }
   0xc   :  { %20 = dma.hbm_to_vmem [thread:$0]  %s157_s0, 256, %s15_s10, [#allocation3], %s124_s12, %s124_s12, %s125_s13  }
   0xd   :  { %119 = dma.done.wait [#allocation3], 256  }
   0xe   :  { %120 = vsyncadd [#allocation3], 4294967040  ;;  %v26_v0 = vld [vmem:[#allocation2] sm:$0xff]  ;;  %v27_v1 = vld [vmem:[#allocation2 + $0x8] sm:$0xff]  ;;  %s126_s0 = smov [#allocation5]  }
   0xf   :  { %v28_v2 = vmul.f32 %v26_v0, %v26_v0  ;;  %v29_v3 = vmul.f32 %v27_v1, %v27_v1  ;;  %v70_v11 = vld [vmem:[%s158_s1] ss:$0 sm:$0xff]  ;;  %s58_s18 = sshll.u32 %s126_s0, 4  ;;  %s59_s18 = int_to_ptr.vmem [resolvable:$true] %s58_s18 }
  0x10   :  { %s99_s19 = scalar_lea.vmem %s59_s18, 256  ;;  %p104_p6 = scmp.lt.s32.totalorder %s59_s18, %s59_s18 }
  0x11   :  { %30 = vadd.xlane.f32.xlu0 %v28_v2  ;;  %p100_p5 = scmp.ne.s32.totalorder %s59_s18, %s99_s19  ;;  %p105_p7 = scmp.lt.s32.totalorder %s99_s19, %s99_s19 }
  0x13   :  { %p106_p8 = por %p105_p7, %p104_p6 }
  0x15   :  { %32 = vadd.xlane.f32.xlu0 %v29_v3  ;;  %p107_p9 = pnand %p106_p8, %p100_p5 }
  0x9a   :  { %v31_v4 = vpop.xlane.xlu0 %30 }
  0x9b   :  { %v34_v5 = vmul.f32 0.03125, %v31_v4 }
  0x9d   :  { %v36_v6 = vadd.f32 1e-06, %v34_v5 }
  0x9e   :  { %v33_v7 = vpop.xlane.xlu0 %32 }
  0x9f   :  { %75 = vrsqrt.f32 %v36_v6  ;;  %v35_v8 = vmul.f32 0.03125, %v33_v7 }
  0xa1   :  { %v37_v9 = vadd.f32 1e-06, %v35_v8 }
  0xa3   :  { %77 = vrsqrt.f32 %v37_v9 }
  0xac   :  { %v76_v10 = vpop.eup %75 }
  0xad   :  { %v40_v12 = vmul.f32 %v76_v10, %v26_v0 }
  0xaf   :  { %v49_v13 = vmul.f32 %v70_v11, %v40_v12 }
  0xb0   :  { %v78_v14 = vpop.eup %77 }
  0xb1   :  { %v41_v15 = vmul.f32 %v78_v14, %v27_v1  ;;  %51 = vst [vmem:[#allocation5] sm:$0xff] %v49_v13 }
  0xb3   :  { %v50_v16 = vmul.f32 %v70_v11, %v41_v15 }
  0xb5   :  { %52 = vst [vmem:[#allocation5 + $0x8] sm:$0xff] %v50_v16 }
  0xb6   :  { %110 = shalt.err (!%p107_p9)
}
  0xb7   :  { %64 = dma.vmem_to_hbm [thread:$0]  %s59_s18, 256, %s159_s2, [#allocation4], %s124_s12, %s124_s12, %s125_s13  }
  0xb8   :  { %121 = dma.done.wait [#allocation4], 256  }
  0xb9   :  { %122 = vsyncadd [#allocation4], 4294967040 }
  0xba   :  { %68 = vsyncpa [#allocation3], 1 }
  0xbb   :  { %69 = vsyncpa [#allocation4], 1 }

</bundles_post_ra>
